<compile_context>
chip_gen: v7x
topology: tpu7x:2x2x1
jax: 0.10.0
libtpu: 0.0.40
codegen_flags: <defaults>
</compile_context>

<pallas_src>
import functools

import jax
import jax.numpy as jnp
from jax import lax
from jax.experimental import pallas as pl
from jax.experimental.pallas import tpu as pltpu


def _round_up(x, m):
    return ((x + m - 1) // m) * m


def _mlp_gaussian_kernel(x_ref, w1_ref, b1_ref, w2_ref, b2_ref, wg_ref, bg_ref,
                         out_ref, *, output_dim):
    """Fused MLP -> lane-dense (mean | softplus(raw_std) | zero-pad) tile."""
    # x arrives in its stored dtype; cast (no-op for f32) right before the MXU.
    x = x_ref[...].astype(w1_ref.dtype)

    # fc layer 1: Linear + ReLU  (MXU accumulates in f32, elementwise stays f32)
    h = jnp.dot(x, w1_ref[...], preferred_element_type=jnp.float32) + b1_ref[...]
    h = jnp.maximum(h, 0.0)

    # fc layer 2: Linear + ReLU
    h = jnp.dot(h.astype(w2_ref.dtype), w2_ref[...],
                preferred_element_type=jnp.float32) + b2_ref[...]
    h = jnp.maximum(h, 0.0)

    # Gaussian head as ONE matmul (mean | raw_std | lane-pad columns fused).
    g = jnp.dot(h.astype(wg_ref.dtype), wg_ref[...],
                preferred_element_type=jnp.float32) + bg_ref[...]

    # softplus applied only to lanes >= output_dim (raw_std + discarded pad
    # lanes), selected via lane-index mask.
    # Numerically-stable softplus: max(x, 0) + log1p(exp(-|x|)).
    sp = jnp.maximum(g, 0.0) + jnp.log1p(jnp.exp(-jnp.abs(g)))
    is_std_lane = lax.broadcasted_iota(jnp.int32, g.shape, 1) >= output_dim
    # TODO(synk): torch's Normal does no epsilon clamp on std; softplus can
    # underflow to 0.0 for raw_std << -88 in f32 — clamp here if downstream
    # requires strictly positive scale.
    out_ref[...] = jnp.where(is_std_lane, sp, g).astype(out_ref.dtype)


@functools.partial(jax.jit,
                   static_argnames=("output_dim", "tile_b", "compute_dtype"))
def fully_connected_gaussian_forward(x, params, output_dim, tile_b=1024,
                                     compute_dtype=jnp.float32):
    """Returns (mean, std) of the Normal distribution, each [B, output_dim]."""
    w1, b1, w2, b2, wg, bg = params
    B = x.shape[0]
    x_flat = x.reshape(B, -1)          # Flatten(); stored dtype, no extra pass
    D = x_flat.shape[1]
    H1 = w1.shape[1]
    H2 = w2.shape[1]
    two_d = 2 * output_dim

    # Lane-pad the network output widths (N dims) to multiples of 128 so all
    # intermediates and the output slab are vreg/lane aligned and stores are
    # unmasked. Weights are tiny, so this one-time pad is negligible; the
    # contraction dim of layer 1 (D) is deliberately NOT padded.
    H1p = _round_up(H1, 128)
    H2p = _round_up(H2, 128)
    Gp = _round_up(two_d, 128)

    w1p = jnp.pad(w1, ((0, 0), (0, H1p - H1))).astype(compute_dtype)
    b1p = jnp.pad(b1, ((0, 0), (0, H1p - H1))).astype(jnp.float32)
    w2p = jnp.pad(w2, ((0, H1p - H1), (0, H2p - H2))).astype(compute_dtype)
    b2p = jnp.pad(b2, ((0, 0), (0, H2p - H2))).astype(jnp.float32)
    wgp = jnp.pad(wg, ((0, H2p - H2), (0, Gp - two_d))).astype(compute_dtype)
    bgp = jnp.pad(bg, ((0, 0), (0, Gp - two_d))).astype(jnp.float32)

    # Batch tiling: single full-array block for small B; otherwise at least two
    # grid steps (both v7x TensorCores get work) of at most tile_b rows each.
    # No wrapper-side batch pad: Pallas bounds-masks the partial tail block.
    if B <= 256:
        tb = B                                         # block == full array dim
    else:
        tb = min(tile_b, _round_up(-(-B // 2), 8))     # >= 2 steps, 8-aligned
    grid = (pl.cdiv(B, tb),)

    const = lambda i: (0, 0)   # weights/biases: same block every grid step

    out = pl.pallas_call(
        functools.partial(_mlp_gaussian_kernel, output_dim=output_dim),
        out_shape=jax.ShapeDtypeStruct((B, Gp), jnp.float32),
        grid=grid,
        in_specs=[
            pl.BlockSpec((tb, D), lambda i: (i, 0)),      # x rows
            pl.BlockSpec((D, H1p), const),                # w1
            pl.BlockSpec((1, H1p), const),                # b1
            pl.BlockSpec((H1p, H2p), const),              # w2
            pl.BlockSpec((1, H2p), const),                # b2
            pl.BlockSpec((H2p, Gp), const),               # wg (fused, lane-padded)
            pl.BlockSpec((1, Gp), const),                 # bg
        ],
        out_specs=pl.BlockSpec((tb, Gp), lambda i: (i, 0)),
        compiler_params=pltpu.CompilerParams(
            dimension_semantics=("parallel",),
            vmem_limit_bytes=64 * 1024 * 1024),
    )(x_flat, w1p, b1p, w2p, b2p, wgp, bgp)

    # torch.chunk(.., 2, dim=1): first half = mean, second half = std; the
    # remaining Gp - 2*output_dim lanes are layout padding and discarded.
    return out[:, :output_dim], out[:, output_dim:two_d]


def _init_linear(key, fan_in, fan_out):
    """PyTorch nn.Linear default init: U(-1/sqrt(fan_in), 1/sqrt(fan_in))."""
    kw, kb = jax.random.split(key)
    bound = 1.0 / jnp.sqrt(fan_in)
    # Stored as [in, out] so the kernel computes x @ W + b (== torch x @ W.T).
    w = jax.random.uniform(kw, (fan_in, fan_out), jnp.float32, -bound, bound)
    b = jax.random.uniform(kb, (1, fan_out), jnp.float32, -bound, bound)
    return w, b


def _reference_forward(x, params, output_dim):
    """Plain-JAX reference of the torch forward pass."""
    w1, b1, w2, b2, wg, bg = params
    h = x.reshape(x.shape[0], -1).astype(jnp.float32)
    h = jnp.maximum(h @ w1 + b1, 0.0)
    h = jnp.maximum(h @ w2 + b2, 0.0)
    g = h @ wg + bg
    mean, raw = g[:, :output_dim], g[:, output_dim:]
    return mean, jax.nn.softplus(raw)


if __name__ == "__main__":
    # Module-consistent small shapes:
    #   input x: [B=2, C=4, H=16]  -> input_dim = 64 after Flatten
    #   layers  = [(64, 32), (32, 32)]  (Linear + ReLU each)
    #   output_dim = 8  -> gaussian head: Linear(32, 16)
    B, C, H = 2, 4, 16
    input_dim = C * H
    hidden = 32
    output_dim = 8

    root = jax.random.PRNGKey(0)
    k_x, k1, k2, k3, k_big = jax.random.split(root, 5)

    x = jax.random.normal(k_x, (B, C, H), jnp.float32)

    w1, b1 = _init_linear(k1, input_dim, hidden)
    w2, b2 = _init_linear(k2, hidden, hidden)
    wg, bg = _init_linear(k3, hidden, 2 * output_dim)
    params = (w1, b1, w2, b2, wg, bg)

    # 1) Small-batch path (single full-array block).
    mean, std = fully_connected_gaussian_forward(x, params, output_dim)
    jax.block_until_ready((mean, std))
    ref_mean, ref_std = _reference_forward(x, params, output_dim)
    assert mean.shape == (B, output_dim) and std.shape == (B, output_dim)
    assert jnp.allclose(mean, ref_mean, atol=1e-4, rtol=1e-4)
    assert jnp.allclose(std, ref_std, atol=1e-4, rtol=1e-4)
    assert bool(jnp.all(std > 0.0))

    # 2) Batched path: 2 "parallel" tiles of 304 rows, non-divisible grid
    #    (600 rows -> last tile bounds-masked by Pallas, no wrapper pad).
    B_large = 600
    x_large = jax.random.normal(k_big, (B_large, C, H), jnp.float32)
    mean_l, std_l = fully_connected_gaussian_forward(x_large, params, output_dim)
    jax.block_until_ready((mean_l, std_l))
    ref_mean_l, ref_std_l = _reference_forward(x_large, params, output_dim)
    assert mean_l.shape == (B_large, output_dim)
    assert jnp.allclose(mean_l, ref_mean_l, atol=1e-4, rtol=1e-4)
    assert jnp.allclose(std_l, ref_std_l, atol=1e-4, rtol=1e-4)
    assert bool(jnp.all(std_l > 0.0))

    # 3) bf16-operand path (v6e/v7x MXU fast path; f32 accumulate/elementwise;
    #    x stays f32 in HBM and is cast in-kernel).
    mean_b, std_b = fully_connected_gaussian_forward(
        x_large, params, output_dim, compute_dtype=jnp.bfloat16)
    jax.block_until_ready((mean_b, std_b))
    assert bool(jnp.all(jnp.isfinite(mean_b))) and bool(jnp.all(std_b > 0.0))
    assert jnp.allclose(mean_b, ref_mean_l, atol=1e-1, rtol=1e-1)
    assert jnp.allclose(std_b, ref_std_l, atol=1e-1, rtol=1e-1)

    print("KERNEL_OK")
</pallas_src>

<mosaic_0001>
module attributes {stable_mosaic.version = 11 : i64} {
  func.func @_mlp_gaussian_kernel(%arg0: i32, %arg1: memref<2x64xf32, #tpu.memory_space<vmem>>, %arg2: memref<64x128xf32, #tpu.memory_space<vmem>>, %arg3: memref<1x128xf32, #tpu.memory_space<vmem>>, %arg4: memref<128x128xf32, #tpu.memory_space<vmem>>, %arg5: memref<1x128xf32, #tpu.memory_space<vmem>>, %arg6: memref<128x128xf32, #tpu.memory_space<vmem>>, %arg7: memref<1x128xf32, #tpu.memory_space<vmem>>, %arg8: memref<2x128xf32, #tpu.memory_space<vmem>>) attributes {dimension_semantics = [#tpu.dimension_semantics<parallel>], iteration_bounds = array<i64: 1>, scalar_prefetch = 0 : i64, scratch_operands = 0 : i64, tpu.core_type = #tpu.core_type<tc>, window_params = [{transform_indices = @transform_0, window_bounds = array<i64: 2, 64>}, {pipeline_mode = #tpu.pipeline_mode<synchronous>, transform_indices = @transform_1, window_bounds = array<i64: 64, 128>}, {pipeline_mode = #tpu.pipeline_mode<synchronous>, transform_indices = @transform_2, window_bounds = array<i64: 1, 128>}, {pipeline_mode = #tpu.pipeline_mode<synchronous>, transform_indices = @transform_3, window_bounds = array<i64: 128, 128>}, {pipeline_mode = #tpu.pipeline_mode<synchronous>, transform_indices = @transform_4, window_bounds = array<i64: 1, 128>}, {pipeline_mode = #tpu.pipeline_mode<synchronous>, transform_indices = @transform_5, window_bounds = array<i64: 128, 128>}, {pipeline_mode = #tpu.pipeline_mode<synchronous>, transform_indices = @transform_6, window_bounds = array<i64: 1, 128>}, {transform_indices = @transform_7, window_bounds = array<i64: 2, 128>}]} {
    %c0 = arith.constant 0 : index
    %c0_0 = arith.constant 0 : index
    %0 = vector.load %arg1[%c0, %c0_0] : memref<2x64xf32, #tpu.memory_space<vmem>>, vector<2x64xf32>
    %c0_1 = arith.constant 0 : index
    %c0_2 = arith.constant 0 : index
    %1 = vector.load %arg2[%c0_1, %c0_2] : memref<64x128xf32, #tpu.memory_space<vmem>>, vector<64x128xf32>
    %cst = arith.constant dense<0.000000e+00> : vector<2x128xf32>
    %2 = tpu.matmul %0, %1, %cst {dimension_numbers = #tpu.dot_dimension_numbers<[1], [0], [0], [1], [0, 0, 1, 1], [], []>} : vector<2x64xf32>, vector<64x128xf32>, vector<2x128xf32> -> vector<2x128xf32>
    %c0_3 = arith.constant 0 : index
    %c0_4 = arith.constant 0 : index
    %3 = vector.load %arg3[%c0_3, %c0_4] : memref<1x128xf32, #tpu.memory_space<vmem>>, vector<1x128xf32>
    %4 = vector.broadcast %3 : vector<1x128xf32> to vector<2x128xf32>
    %5 = arith.addf %2, %4 : vector<2x128xf32>
    %cst_5 = arith.constant 0.000000e+00 : f32
    %6 = vector.broadcast %cst_5 : f32 to vector<2x128xf32>
    %7 = arith.maximumf %5, %6 : vector<2x128xf32>
    %c0_6 = arith.constant 0 : index
    %c0_7 = arith.constant 0 : index
    %8 = vector.load %arg4[%c0_6, %c0_7] : memref<128x128xf32, #tpu.memory_space<vmem>>, vector<128x128xf32>
    %cst_8 = arith.constant dense<0.000000e+00> : vector<2x128xf32>
    %9 = tpu.matmul %7, %8, %cst_8 {dimension_numbers = #tpu.dot_dimension_numbers<[1], [0], [0], [1], [0, 0, 1, 1], [], []>} : vector<2x128xf32>, vector<128x128xf32>, vector<2x128xf32> -> vector<2x128xf32>
    %c0_9 = arith.constant 0 : index
    %c0_10 = arith.constant 0 : index
    %10 = vector.load %arg5[%c0_9, %c0_10] : memref<1x128xf32, #tpu.memory_space<vmem>>, vector<1x128xf32>
    %11 = vector.broadcast %10 : vector<1x128xf32> to vector<2x128xf32>
    %12 = arith.addf %9, %11 : vector<2x128xf32>
    %cst_11 = arith.constant 0.000000e+00 : f32
    %13 = vector.broadcast %cst_11 : f32 to vector<2x128xf32>
    %14 = arith.maximumf %12, %13 : vector<2x128xf32>
    %c0_12 = arith.constant 0 : index
    %c0_13 = arith.constant 0 : index
    %15 = vector.load %arg6[%c0_12, %c0_13] : memref<128x128xf32, #tpu.memory_space<vmem>>, vector<128x128xf32>
    %cst_14 = arith.constant dense<0.000000e+00> : vector<2x128xf32>
    %16 = tpu.matmul %14, %15, %cst_14 {dimension_numbers = #tpu.dot_dimension_numbers<[1], [0], [0], [1], [0, 0, 1, 1], [], []>} : vector<2x128xf32>, vector<128x128xf32>, vector<2x128xf32> -> vector<2x128xf32>
    %c0_15 = arith.constant 0 : index
    %c0_16 = arith.constant 0 : index
    %17 = vector.load %arg7[%c0_15, %c0_16] : memref<1x128xf32, #tpu.memory_space<vmem>>, vector<1x128xf32>
    %18 = vector.broadcast %17 : vector<1x128xf32> to vector<2x128xf32>
    %19 = arith.addf %16, %18 : vector<2x128xf32>
    %cst_17 = arith.constant 0.000000e+00 : f32
    %20 = vector.broadcast %cst_17 : f32 to vector<2x128xf32>
    %21 = arith.maximumf %19, %20 : vector<2x128xf32>
    %22 = math.absf %19 : vector<2x128xf32>
    %cst_18 = arith.constant 0.000000e+00 : f32
    %23 = vector.broadcast %cst_18 : f32 to vector<2x128xf32>
    %24 = arith.subf %23, %22 : vector<2x128xf32>
    %25 = math.exp %24 : vector<2x128xf32>
    %26 = math.log1p %25 : vector<2x128xf32>
    %27 = arith.addf %21, %26 : vector<2x128xf32>
    %28 = tpu.iota {dimensions = array<i32: 1>} : vector<2x128xi32>
    %c8_i32 = arith.constant 8 : i32
    %29 = vector.broadcast %c8_i32 : i32 to vector<2x128xi32>
    %30 = arith.cmpi sge, %28, %29 : vector<2x128xi32>
    %31 = arith.select %30, %27, %19 : vector<2x128xi1>, vector<2x128xf32>
    %c0_19 = arith.constant 0 : index
    %c0_20 = arith.constant 0 : index
    %32 = vector.load %arg8[%c0_19, %c0_20] : memref<2x128xf32, #tpu.memory_space<vmem>>, vector<2x128xf32>
    tpu.vector_store %arg8[%c0_19, %c0_20], %31 {strides = array<i32>} : memref<2x128xf32, #tpu.memory_space<vmem>>, vector<2x128xf32>,
    return
  }
  func.func @transform_0(%arg0: i32) -> (i32, i32) {
    %c0_i32 = arith.constant 0 : i32
    %c0_i32_0 = arith.constant 0 : i32
    return %arg0, %c0_i32 : i32, i32
  }
  func.func @transform_1(%arg0: i32) -> (i32, i32) {
    %c0_i32 = arith.constant 0 : i32
    %c0_i32_0 = arith.constant 0 : i32
    %c0_i32_1 = arith.constant 0 : i32
    return %c0_i32, %c0_i32_0 : i32, i32
  }
  func.func @transform_2(%arg0: i32) -> (i32, i32) {
    %c0_i32 = arith.constant 0 : i32
    %c0_i32_0 = arith.constant 0 : i32
    %c0_i32_1 = arith.constant 0 : i32
    return %c0_i32, %c0_i32_0 : i32, i32
  }
  func.func @transform_3(%arg0: i32) -> (i32, i32) {
    %c0_i32 = arith.constant 0 : i32
    %c0_i32_0 = arith.constant 0 : i32
    %c0_i32_1 = arith.constant 0 : i32
    return %c0_i32, %c0_i32_0 : i32, i32
  }
  func.func @transform_4(%arg0: i32) -> (i32, i32) {
    %c0_i32 = arith.constant 0 : i32
    %c0_i32_0 = arith.constant 0 : i32
    %c0_i32_1 = arith.constant 0 : i32
    return %c0_i32, %c0_i32_0 : i32, i32
  }
  func.func @transform_5(%arg0: i32) -> (i32, i32) {
    %c0_i32 = arith.constant 0 : i32
    %c0_i32_0 = arith.constant 0 : i32
    %c0_i32_1 = arith.constant 0 : i32
    return %c0_i32, %c0_i32_0 : i32, i32
  }
  func.func @transform_6(%arg0: i32) -> (i32, i32) {
    %c0_i32 = arith.constant 0 : i32
    %c0_i32_0 = arith.constant 0 : i32
    %c0_i32_1 = arith.constant 0 : i32
    return %c0_i32, %c0_i32_0 : i32, i32
  }
  func.func @transform_7(%arg0: i32) -> (i32, i32) {
    %c0_i32 = arith.constant 0 : i32
    %c0_i32_0 = arith.constant 0 : i32
    return %arg0, %c0_i32 : i32, i32
  }
}

</mosaic_0001>

<bundles_post_ra>
// kernel: fully_connected_gaussian_forward.1
= control target key start
LH: loop header
LB: loop body
LE: loop exit
PB: predicated region body
PF: predicated region fallthrough
CT: control target
= control target key end

     0   :  { %12 = vsyncpa [#allocation3], 0  ;;  %s1010_s0 = inlined_call_operand.hbm [shape: f32[2,64], index: 0, kind: input, shape index: {}]   ;;  %s1011_s1 = inlined_call_operand.hbm [shape: f32[64,128], index: 1, kind: input, shape index: {}]   ;;  %s1012_s2 = inlined_call_operand.hbm [shape: f32[1,128], index: 2, kind: input, shape index: {}]   ;;  %s1013_s3 = inlined_call_operand.hbm [shape: f32[128,128], index: 3, kind: input, shape index: {}]   ;;  %s1014_s4 = inlined_call_operand.hbm [shape: f32[1,128], index: 4, kind: input, shape index: {}]   ;;  %s1015_s5 = inlined_call_operand.hbm [shape: f32[128,128], index: 5, kind: input, shape index: {}]   ;;  %s1016_s6 = inlined_call_operand.hbm [shape: f32[1,128], index: 6, kind: input, shape index: {}]   ;;  %s1017_s7 = inlined_call_operand.hbm [shape: f32[2,128], index: 7, kind: output, shape index: {}]  }
   0x1   :  { %13 = vsyncpa [#allocation6], 0 }
   0x2   :  { %14 = vsyncpa [#allocation9], 0 }
   0x3   :  { %15 = vsyncpa [#allocation12], 0 }
   0x4   :  { %16 = vsyncpa [#allocation4], 0  ;;  %s829_s24 = smov [#allocation5]   ;;  %s643_s28 = scalar_lea.hbm %s1011_s1, 1024 }
   0x5   :  { %s32_s25 = sshll.u32 %s829_s24, 4  ;;  %p644_p0 = scmp.ne.s32.totalorder %s1011_s1, %s643_s28  ;;  %s33_s25 = int_to_ptr.vmem [resolvable:$true] %s32_s25 }
   0x6   :  { %p647_p1 = scmp.lt.u32.totalorder %s643_s28, %s1011_s1 }
   0x8   :  { %p649_p2 = pnand %p647_p1, %p644_p0 }
   0xa   :  { %652 = shalt.err (!%p649_p2)
}
   0xb   :  { %s653_s10 = scalar_lea.vmem %s33_s25, 1024  ;;  %p658_p4 = scmp.lt.s32.totalorder %s33_s25, %s33_s25 }
   0xc   :  { %p654_p3 = scmp.ne.s32.totalorder %s33_s25, %s653_s10  ;;  %p659_p5 = scmp.lt.s32.totalorder %s653_s10, %s653_s10 }
   0xe   :  { %p660_p6 = por %p659_p5, %p658_p4 }
  0x10   :  { %p661_p7 = pnand %p660_p6, %p654_p3 }
  0x12   :  { %664 = shalt.err (!%p661_p7)
}
  0x13   :  { %s830_s11 = smov 128   ;;  %s831_s12 = smov 8  }
  0x14   :  { %38 = dma.hbm_to_vmem [thread:$0]  %s1011_s1, 1024, %s33_s25, [#allocation6], %s830_s11, %s830_s11, %s831_s12  }
  0x15   :  { %s832_s15 = smov [#allocation8]   ;;  %s833_s17 = smov [#allocation11]  }
  0x16   :  { %s54_s16 = sshll.u32 %s832_s15, 4  ;;  %s76_s18 = sshll.u32 %s833_s17, 4  ;;  %s55_s16 = int_to_ptr.vmem [resolvable:$true] %s54_s16  ;;  %s77_s18 = int_to_ptr.vmem [resolvable:$true] %s76_s18 }
  0x17   :  { %s665_s21 = scalar_lea.hbm %s1013_s3, 2048 }
  0x18   :  { %p666_p8 = scmp.ne.s32.totalorder %s1013_s3, %s665_s21  ;;  %p669_p9 = scmp.lt.u32.totalorder %s665_s21, %s1013_s3 }
  0x1a   :  { %p671_p10 = pnand %p669_p9, %p666_p8 }
  0x1c   :  { %674 = shalt.err (!%p671_p10)
}
  0x1d   :  { %s675_s1 = scalar_lea.vmem %s55_s16, 2048  ;;  %p680_p12 = scmp.lt.s32.totalorder %s55_s16, %s55_s16 }
  0x1e   :  { %p676_p11 = scmp.ne.s32.totalorder %s55_s16, %s675_s1  ;;  %p681_p13 = scmp.lt.s32.totalorder %s675_s1, %s675_s1 }
  0x20   :  { %p682_p0 = por %p681_p13, %p680_p12 }
  0x22   :  { %p683_p1 = pnand %p682_p0, %p676_p11 }
  0x24   :  { %686 = shalt.err (!%p683_p1)
}
  0x25   :  { %60 = dma.hbm_to_vmem [thread:$0]  %s1013_s3, 2048, %s55_s16, [#allocation9], %s830_s11, %s830_s11, %s831_s12  }
  0x26   :  { %s687_s30 = scalar_lea.hbm %s1015_s5, 2048 }
  0x27   :  { %p688_p2 = scmp.ne.s32.totalorder %s1015_s5, %s687_s30  ;;  %p691_p3 = scmp.lt.u32.totalorder %s687_s30, %s1015_s5 }
  0x29   :  { %p693_p4 = pnand %p691_p3, %p688_p2 }
  0x2b   :  { %696 = shalt.err (!%p693_p4)
}
  0x2c   :  { %s697_s14 = scalar_lea.vmem %s77_s18, 2048  ;;  %p702_p6 = scmp.lt.s32.totalorder %s77_s18, %s77_s18 }
  0x2d   :  { %p698_p5 = scmp.ne.s32.totalorder %s77_s18, %s697_s14  ;;  %p703_p7 = scmp.lt.s32.totalorder %s697_s14, %s697_s14 }
  0x2f   :  { %p704_p8 = por %p703_p7, %p702_p6 }
  0x31   :  { %p705_p9 = pnand %p704_p8, %p698_p5 }
  0x33   :  { %708 = shalt.err (!%p705_p9)
}
  0x34   :  { %82 = dma.hbm_to_vmem [thread:$0]  %s1015_s5, 2048, %s77_s18, [#allocation12], %s830_s11, %s830_s11, %s831_s12  }
  0x35   :  { %s834_s16 = smov [#allocation2]   ;;  %s835_s19 = smov [#allocation7]  }
  0x36   :  { %s23_s17 = sshll.u32 %s834_s16, 4  ;;  %s45_s20 = sshll.u32 %s835_s19, 4  ;;  %s24_s17 = int_to_ptr.vmem [resolvable:$true] %s23_s17  ;;  %s46_s20 = int_to_ptr.vmem [resolvable:$true] %s45_s20 }
  0x37   :  { %s709_s23 = scalar_lea.hbm %s1010_s0, 32 }
  0x38   :  { %p710_p10 = scmp.ne.s32.totalorder %s1010_s0, %s709_s23  ;;  %p713_p11 = scmp.lt.u32.totalorder %s709_s23, %s1010_s0 }
  0x3a   :  { %p715_p12 = pnand %p713_p11, %p710_p10 }
  0x3c   :  { %718 = shalt.err (!%p715_p12)
}
  0x3d   :  { %s719_s5 = scalar_lea.vmem %s24_s17, 32  ;;  %p724_p0 = scmp.lt.s32.totalorder %s24_s17, %s24_s17 }
  0x3e   :  { %p720_p13 = scmp.ne.s32.totalorder %s24_s17, %s719_s5  ;;  %p725_p1 = scmp.lt.s32.totalorder %s719_s5, %s719_s5 }
  0x40   :  { %p726_p2 = por %p725_p1, %p724_p0 }
  0x42   :  { %p727_p3 = pnand %p726_p2, %p720_p13 }
  0x44   :  { %730 = shalt.err (!%p727_p3)
}
  0x45   :  { %26 = dma.hbm_to_vmem [thread:$0]  %s1010_s0, 32, %s24_s17, [#allocation3]  }
  0x46   :  { %s731_s28 = scalar_lea.hbm %s1012_s2, 16 }
  0x47   :  { %p732_p4 = scmp.ne.s32.totalorder %s1012_s2, %s731_s28  ;;  %p735_p5 = scmp.lt.u32.totalorder %s731_s28, %s1012_s2 }
  0x49   :  { %p737_p6 = pnand %p735_p5, %p732_p4 }
  0x4b   :  { %740 = shalt.err (!%p737_p6)
}
  0x4c   :  { %s741_s10 = scalar_lea.vmem %s46_s20, 16  ;;  %s745_s13 = scalar_lea.vmem %s46_s20, 32 }
  0x4d   :  { %p742_p7 = scmp.ne.s32.totalorder %s46_s20, %s741_s10  ;;  %p746_p8 = scmp.lt.s32.totalorder %s46_s20, %s46_s20 }
  0x4e   :  { %p747_p9 = scmp.lt.s32.totalorder %s745_s13, %s741_s10 }
  0x50   :  { %p748_p10 = por %p747_p9, %p746_p8 }
  0x52   :  { %p749_p11 = pnand %p748_p10, %p742_p7 }
  0x54   :  { %752 = shalt.err (!%p749_p11)
}
  0x55   :  { %48 = dma.hbm_to_vmem [thread:$0]  %s1012_s2, 16, %s46_s20, [#allocation6]  }
  0x56   :  { %s836_s3 = smov [#allocation10]   ;;  %s837_s16 = smov [#allocation13]  }
  0x57   :  { %s67_s15 = sshll.u32 %s836_s3, 4  ;;  %s89_s17 = sshll.u32 %s837_s16, 4  ;;  %s68_s15 = int_to_ptr.vmem [resolvable:$true] %s67_s15  ;;  %s90_s17 = int_to_ptr.vmem [resolvable:$true] %s89_s17 }
  0x58   :  { %s753_s22 = scalar_lea.hbm %s1014_s4, 16 }
  0x59   :  { %p754_p12 = scmp.ne.s32.totalorder %s1014_s4, %s753_s22  ;;  %p757_p13 = scmp.lt.u32.totalorder %s753_s22, %s1014_s4 }
  0x5b   :  { %p759_p0 = pnand %p757_p13, %p754_p12 }
  0x5d   :  { %762 = shalt.err (!%p759_p0)
}
  0x5e   :  { %s763_s2 = scalar_lea.vmem %s68_s15, 16  ;;  %s767_s20 = scalar_lea.vmem %s68_s15, 32 }
  0x5f   :  { %p764_p1 = scmp.ne.s32.totalorder %s68_s15, %s763_s2  ;;  %p768_p2 = scmp.lt.s32.totalorder %s68_s15, %s68_s15 }
  0x60   :  { %p769_p3 = scmp.lt.s32.totalorder %s767_s20, %s763_s2 }
  0x62   :  { %p770_p4 = por %p769_p3, %p768_p2 }
  0x64   :  { %p771_p5 = pnand %p770_p4, %p764_p1 }
  0x66   :  { %774 = shalt.err (!%p771_p5)
}
  0x67   :  { %70 = dma.hbm_to_vmem [thread:$0]  %s1014_s4, 16, %s68_s15, [#allocation9]  }
  0x68   :  { %s775_s18 = scalar_lea.hbm %s1016_s6, 16 }
  0x69   :  { %p776_p6 = scmp.ne.s32.totalorder %s1016_s6, %s775_s18  ;;  %p779_p7 = scmp.lt.u32.totalorder %s775_s18, %s1016_s6 }
  0x6b   :  { %p781_p8 = pnand %p779_p7, %p776_p6 }
  0x6d   :  { %784 = shalt.err (!%p781_p8)
}
  0x6e   :  { %s785_s8 = scalar_lea.vmem %s90_s17, 16  ;;  %s789_s9 = scalar_lea.vmem %s90_s17, 32 }
  0x6f   :  { %p786_p9 = scmp.ne.s32.totalorder %s90_s17, %s785_s8  ;;  %p790_p10 = scmp.lt.s32.totalorder %s90_s17, %s90_s17 }
  0x70   :  { %p791_p11 = scmp.lt.s32.totalorder %s789_s9, %s785_s8 }
  0x72   :  { %p792_p12 = por %p791_p11, %p790_p10 }
  0x74   :  { %p793_p13 = pnand %p792_p12, %p786_p9 }
  0x76   :  { %796 = shalt.err (!%p793_p13)
}
  0x77   :  { %92 = dma.hbm_to_vmem [thread:$0]  %s1016_s6, 16, %s90_s17, [#allocation12]  }
  0x78   :  { %819 = dma.done.wait [#allocation3], 32  }
  0x79   :  { %820 = vsyncadd [#allocation3], 4294967264 }
  0x7a   :  { %821 = dma.done.wait [#allocation6], 1040  }
  0x7b   :  { %822 = vsyncadd [#allocation6], 4294966256 }
  0x7c   :  { %823 = dma.done.wait [#allocation9], 2064  }
  0x7d   :  { %824 = vsyncadd [#allocation9], 4294965232 }
  0x7e   :  { %825 = dma.done.wait [#allocation12], 2064  }
  0x7f   :  { %826 = vsyncadd [#allocation12], 4294965232  ;;  %v838_v0 = vmov 0.0|0.0   ;;  %vm839_vm0 = vmmov 0   ;;  %v840_v1 = vmov 0.0   ;;  %v115_v2 = vld [vmem:[#allocation5] sm:$0xff] }
  0x80   :  { %566 = vmatprep.subr.bf16.mxu0 %v838_v0  ;;  %493 = vmatprep.mubr.msk.f32.mxu0 %vm839_vm0, %v840_v1  ;;  %v116_v3 = vld [vmem:[#allocation5 + $0x8] sm:$0xff]  ;;  %v117_v4 = vld [vmem:[#allocation5 + $0x10] sm:$0xff]  ;;  %v118_v6 = vld [vmem:[#allocation5 + $0x18] sm:$0xff]  ;;  %vm130_vm1 = vcmask 523264   ;;  %s841_s6 = smov [#allocation14]  }
  0x81   :  { %578 = vmatprep.subr.bf16.mxu1 %v838_v0  ;;  %528 = vmatprep.mubr.msk.f32.mxu1 %vm839_vm0, %v840_v1  ;;  %v567_v5 = vpack.c.bf16 %v116_v3, %v115_v2  ;;  %v570_v7 = vpack.c.bf16 %v118_v6, %v117_v4  ;;  %v205_v8 = vld [vmem:[#allocation8] sm:$0xff]  ;;  %v206_v9 = vld [vmem:[#allocation8 + $0x8] sm:$0xff]  ;;  %v207_v10 = vld [vmem:[#allocation8 + $0x10] sm:$0xff]  ;;  %s418_s13 = sshll.u32 %s841_s6, 4  ;;  %s419_s13 = int_to_ptr.vmem [resolvable:$true] %s418_s13 }
  0x82   :  { %v119_v11 = vld [vmem:[#allocation5 + $0x20] sm:$0xff]  ;;  %v120_v12 = vld [vmem:[#allocation5 + $0x28] sm:$0xff]  ;;  %v579_v13 = vpack.c.bf16 %v206_v9, %v205_v8  ;;  %v121_v19 = vld [vmem:[#allocation5 + $0x30] sm:$0xff]  ;;  %s797_s0 = scalar_lea.vmem %s419_s13, 32  ;;  %p802_p1 = scmp.lt.s32.totalorder %s419_s13, %s419_s13 }
  0x83   :  { %568 = vmatpush3.bf16.msra.mxu0 %v567_v5  ;;  %v208_v14 = vld [vmem:[#allocation8 + $0x18] sm:$0xff]  ;;  %v573_v16 = vpack.c.bf16 %v120_v12, %v119_v11  ;;  %v209_v17 = vld [vmem:[#allocation8 + $0x20] sm:$0xff]  ;;  %v210_v18 = vld [vmem:[#allocation8 + $0x28] sm:$0xff]  ;;  %p798_p0 = scmp.ne.s32.totalorder %s419_s13, %s797_s0  ;;  %p803_p2 = scmp.lt.s32.totalorder %s797_s0, %s797_s0 }
  0x84   :  { %569 = vmatprep.subr.bf16.mxu0 %v838_v0  ;;  %580 = vmatpush3.bf16.msra.mxu1 %v579_v13  ;;  %v582_v15 = vpack.c.bf16 %v208_v14, %v207_v10  ;;  %v122_v20 = vld [vmem:[#allocation5 + $0x38] sm:$0xff]  ;;  %v585_v21 = vpack.c.bf16 %v210_v18, %v209_v17  ;;  %v213_v27 = vld [vmem:[#allocation8 + $0x40] sm:$0xff]  ;;  %v214_v28 = vld [vmem:[#allocation8 + $0x48] sm:$0xff] }
  0x85   :  { %581 = vmatprep.subr.bf16.mxu1 %v838_v0  ;;  %v576_v22 = vpack.c.bf16 %v122_v20, %v121_v19  ;;  %v211_v23 = vld [vmem:[#allocation8 + $0x30] sm:$0xff]  ;;  %v212_v24 = vld [vmem:[#allocation8 + $0x38] sm:$0xff]  ;;  %v591_v29 = vpack.c.bf16 %v214_v28, %v213_v27  ;;  %v217_v33 = vld [vmem:[#allocation8 + $0x60] sm:$0xff]  ;;  %v407_v19 = vlaneseq  ;;  %p804_p3 = por %p803_p2, %p802_p1 }
  0x86   :  { %v588_v25 = vpack.c.bf16 %v212_v24, %v211_v23  ;;  %v114_v26 = vld [vmem:[#allocation2] sm:$0x3]  ;;  %v215_v30 = vld [vmem:[#allocation8 + $0x50] sm:$0xff]  ;;  %v218_v34 = vld [vmem:[#allocation8 + $0x68] sm:$0xff] }
  0x87   :  { %571 = vmatpush3.bf16.msra.mxu0 %v570_v7  ;;  %v216_v31 = vld [vmem:[#allocation8 + $0x58] sm:$0xff]  ;;  %v597_v35 = vpack.c.bf16 %v218_v34, %v217_v33  ;;  %v219_v36 = vld [vmem:[#allocation8 + $0x70] sm:$0xff]  ;;  %v299_v39 = vld [vmem:[#allocation11] sm:$0xff]  ;;  %p805_p4 = pnand %p804_p3, %p798_p0 }
  0x88   :  { %572 = vmatprep.subr.bf16.mxu0 %v838_v0  ;;  %583 = vmatpush3.bf16.msra.mxu1 %v582_v15  ;;  %v594_v32 = vpack.c.bf16 %v216_v31, %v215_v30  ;;  %v220_v37 = vld [vmem:[#allocation8 + $0x78] sm:$0xff]  ;;  %v300_v40 = vld [vmem:[#allocation11 + $0x8] sm:$0xff]  ;;  %v303_v45 = vld [vmem:[#allocation11 + $0x20] sm:$0xff] }
  0x89   :  { %584 = vmatprep.subr.bf16.mxu1 %v838_v0  ;;  %v600_v38 = vpack.c.bf16 %v220_v37, %v219_v36  ;;  %v301_v41 = vld [vmem:[#allocation11 + $0x10] sm:$0xff]  ;;  %v603_v42 = vpack.c.bf16 %v300_v40, %v299_v39  ;;  %v302_v43 = vld [vmem:[#allocation11 + $0x18] sm:$0xff]  ;;  %v304_v46 = vld [vmem:[#allocation11 + $0x28] sm:$0xff] }
  0x8a   :  { %v606_v44 = vpack.c.bf16 %v302_v43, %v301_v41  ;;  %v609_v47 = vpack.c.bf16 %v304_v46, %v303_v45  ;;  %v305_v48 = vld [vmem:[#allocation11 + $0x30] sm:$0xff]  ;;  %v306_v49 = vld [vmem:[#allocation11 + $0x38] sm:$0xff]  ;;  %v307_v51 = vld [vmem:[#allocation11 + $0x40] sm:$0xff] }
  0x8b   :  { %574 = vmatpush3.bf16.msra.mxu0 %v573_v16  ;;  %v612_v50 = vpack.c.bf16 %v306_v49, %v305_v48  ;;  %v308_v52 = vld [vmem:[#allocation11 + $0x48] sm:$0xff]  ;;  %v309_v54 = vld [vmem:[#allocation11 + $0x50] sm:$0xff]  ;;  %v310_v55 = vld [vmem:[#allocation11 + $0x58] sm:$0xff] }
  0x8c   :  { %575 = vmatprep.subr.bf16.mxu0 %v838_v0  ;;  %586 = vmatpush3.bf16.msra.mxu1 %v585_v21  ;;  %v615_v53 = vpack.c.bf16 %v308_v52, %v307_v51  ;;  %v618_v56 = vpack.c.bf16 %v310_v55, %v309_v54  ;;  %v311_v57 = vld [vmem:[#allocation11 + $0x60] sm:$0xff]  ;;  %v312_v58 = vld [vmem:[#allocation11 + $0x68] sm:$0xff]  ;;  %v430_v60 = vld [vmem:[#allocation7] ss:$0 sm:$0xff] }
  0x8d   :  { %587 = vmatprep.subr.bf16.mxu1 %v838_v0  ;;  %v621_v59 = vpack.c.bf16 %v312_v58, %v311_v57  ;;  %v313_v2 = vld [vmem:[#allocation11 + $0x70] sm:$0xff]  ;;  %v314_v3 = vld [vmem:[#allocation11 + $0x78] sm:$0xff]  ;;  %v433_v10 = vld [vmem:[#allocation13] ss:$0 sm:$0xff] }
  0x8e   :  { %v624_v4 = vpack.c.bf16 %v314_v3, %v313_v2  ;;  %v432_v5 = vld [vmem:[#allocation10] ss:$0 sm:$0xff] }
  0x8f   :  { %577 = vmatpush3.bf16.msra.mxu0 %v576_v22  ;;  %v408_v22 = vand.u32 127, %v407_v19 }
  0x90   :  { %602 = vmatprep.subr.bf16.mxu0 %v838_v0  ;;  %589 = vmatpush3.bf16.msra.mxu1 %v588_v25 }
  0x91   :  { %590 = vmatprep.subr.bf16.mxu1 %v838_v0  ;;  %vm409_vm3 = vcmp.ge.s32.totalorder %v408_v22, 8 }
  0x92   :  { %494 = vmatmul.mubr.msk.f32.vlgmr.msra.gmra.mrb[0].mxu0 %vm130_vm1, %v114_v26 }
  0x93   :  { %563 = vmatprep.mubr.msk.f32.mxu0 %vm839_vm0, %v840_v1  ;;  %604 = vmatpush3.bf16.msra.mxu0 %v603_v42 }
  0x94   :  { %592 = vmatpush3.bf16.msra.mxu1 %v591_v29  ;;  %605 = vmatprep.subr.bf16.mxu0 %v838_v0 }
  0x95   :  { %593 = vmatprep.subr.bf16.mxu1 %v838_v0 }
  0x97   :  { %607 = vmatpush3.bf16.msra.mxu0 %v606_v44 }
  0x98   :  { %595 = vmatpush3.bf16.msra.mxu1 %v594_v32  ;;  %608 = vmatprep.subr.bf16.mxu0 %v838_v0 }
  0x99   :  { %596 = vmatprep.subr.bf16.mxu1 %v838_v0 }
  0x9b   :  { %610 = vmatpush3.bf16.msra.mxu0 %v609_v47 }
  0x9c   :  { %598 = vmatpush3.bf16.msra.mxu1 %v597_v35  ;;  %611 = vmatprep.subr.bf16.mxu0 %v838_v0 }
  0x9d   :  { %599 = vmatprep.subr.bf16.mxu1 %v838_v0 }
  0x9f   :  { %613 = vmatpush3.bf16.msra.mxu0 %v612_v50 }
  0xa0   :  { %601 = vmatpush3.bf16.msra.mxu1 %v600_v38  ;;  %614 = vmatprep.subr.bf16.mxu0 %v838_v0 }
  0xa3   :  { %616 = vmatpush3.bf16.msra.mxu0 %v615_v53 }
  0xa4   :  { %617 = vmatprep.subr.bf16.mxu0 %v838_v0 }
  0xa7   :  { %619 = vmatpush3.bf16.msra.mxu0 %v618_v56 }
  0xa8   :  { %620 = vmatprep.subr.bf16.mxu0 %v838_v0 }
  0xab   :  { %622 = vmatpush3.bf16.msra.mxu0 %v621_v59 }
  0xac   :  { %623 = vmatprep.subr.bf16.mxu0 %v838_v0 }
  0xaf   :  { %625 = vmatpush3.bf16.msra.mxu0 %v624_v4 }
 0x165   :  { %v200_v61 = vpop.f32.mrb[0].mxu0 }
 0x166   :  { %v201_v62 = vadd.f32 %v430_v60, %v200_v61  ;;  %v495_v63 = vpop.f32.mrb[1].mxu0 }
 0x168   :  { %v204_v1 = vmax.f32 %v201_v62, 0.0 }
 0x16a   :  { %529 = vmatmul.mubr.f32.vlgmr.msra.gmra.mrb[0].mxu1 %v204_v1 }
 0x23d   :  { %v294_v6 = vpop.f32.mrb[0].mxu1 }
 0x23e   :  { %v295_v7 = vadd.f32 %v432_v5, %v294_v6  ;;  %v530_v8 = vpop.f32.mrb[1].mxu1 }
 0x240   :  { %v298_v9 = vmax.f32 %v295_v7, 0.0 }
 0x242   :  { %564 = vmatmul.mubr.f32.vlgmr.msra.gmra.mrb[2].mxu0 %v298_v9 }
 0x315   :  { %v388_v11 = vpop.f32.mrb[2].mxu0 }
 0x316   :  { %v389_v12 = vadd.f32 %v433_v10, %v388_v11  ;;  %v565_v0 = vpop.f32.mrb[3].mxu0 }
 0x318   :  { %v393_v13 = vand.u32 2147483647, %v389_v12  ;;  %v392_v26 = vmax.f32 %v389_v12, 0.0 }
 0x31a   :  { %v394_v14 = vsub.f32 0.0, %v393_v13 }
 0x31c   :  { %v395_v15 = vmul.f32 1.442695, %v394_v14 }
 0x31e   :  { %639 = vpow2.f32 %v395_v15 }
 0x328   :  { %v640_v16 = vpop.eup %639 }
 0x329   :  { %v397_v17 = vadd.f32 1.0, %v640_v16  ;;  %v400_v18 = vmul.f32 -0.5, %v640_v16  ;;  %v403_v21 = vand.u32 2147483647, %v640_v16 }
 0x32b   :  { %641 = vlog2.f32 %v397_v17  ;;  %v401_v20 = vadd.f32 1.0, %v400_v18  ;;  %vm404_vm2 = vcmp.lt.f32.partialorder %v403_v21, 0.0004427343 }
 0x32d   :  { %v402_v25 = vmul.f32 %v640_v16, %v401_v20 }
 0x335   :  { %v642_v23 = vpop.eup %641 }
 0x336   :  { %v399_v24 = vmul.f32 0.6931472, %v642_v23 }
 0x338   :  { %v405_v27 = vsel %vm404_vm2, %v402_v25, %v399_v24 }
 0x339   :  { %v406_v28 = vadd.f32 %v405_v27, %v392_v26 }
 0x33b   :  { %v410_v29 = vsel %vm409_vm3, %v406_v28, %v389_v12 }
 0x33c   :  { %411 = vst [vmem:[#allocation14] sm:$0x3] %v410_v29 }
 0x33d   :  { %808 = shalt.err (!%p805_p4)
}
 0x33e   :  { %s809_s15 = scalar_lea.hbm %s1017_s7, 32 }
 0x33f   :  { %p810_p5 = scmp.ne.s32.totalorder %s1017_s7, %s809_s15  ;;  %p813_p6 = scmp.lt.u32.totalorder %s809_s15, %s1017_s7 }
 0x341   :  { %p815_p7 = pnand %p813_p6, %p810_p5 }
 0x343   :  { %818 = shalt.err (!%p815_p7)
}
 0x344   :  { %421 = dma.vmem_to_hbm [thread:$0]  %s419_s13, 32, %s1017_s7, [#allocation4]  }
 0x345   :  { %827 = dma.done.wait [#allocation4], 32  }
 0x346   :  { %828 = vsyncadd [#allocation4], 4294967264 }
 0x347   :  { %425 = vsyncpa [#allocation3], 1 }
 0x348   :  { %426 = vsyncpa [#allocation6], 1 }
 0x349   :  { %427 = vsyncpa [#allocation9], 1 }
 0x34a   :  { %428 = vsyncpa [#allocation12], 1 }
 0x34b   :  { %429 = vsyncpa [#allocation4], 1 }

</bundles_post_ra>
